<compile_context>
chip_gen: v5e
topology: v5e:2x2
jax: 0.10.0
libtpu: 0.0.40
codegen_flags: <defaults>
</compile_context>

<pallas_src>
import functools
import math

import jax
import jax.numpy as jnp
from jax.experimental import pallas as pl
from jax.experimental.pallas import tpu as pltpu


# ----------------------------------------------------------------------------
# Kernel
# ----------------------------------------------------------------------------
def t5_layernorm_kernel(x_ref, w_ref, o_ref, *, eps):
    # Invariant: rows are independent.  For a partial last block the padded
    # read region holds unspecified data, but those rows are never written
    # back (output OOB rows are clipped), so the garbage cannot escape.
    x = x_ref[...].astype(jnp.float32)                      # (tm, D)
    var = jnp.mean(x * x, axis=-1, keepdims=True)           # (tm, 1)
    xn = x * jax.lax.rsqrt(var + eps)
    o_ref[...] = (w_ref[...].astype(jnp.float32) * xn).astype(o_ref.dtype)


# ----------------------------------------------------------------------------
# Tiling helpers
# ----------------------------------------------------------------------------
def _cdiv(a, b):
    return -(-a // b)


def _vmem_capacity_bytes():
    """Physical VMEM per TensorCore; conservative fallback if unqueryable."""
    try:
        info = pltpu.get_tpu_info()
        cap = int(getattr(info, "vmem_capacity_bytes", 0) or 0)
        if cap > 0:
            return cap
    except Exception:
        pass
    return 64 * 1024 * 1024  # v7x per-TC VMEM: the smallest across generations


def _pick_row_tile(M, D, in_itemsize, out_itemsize, vmem_cap):
    """Largest sublane-aligned row tile whose resident VMEM footprint
    (double-buffered in/out blocks + f32 temporaries) fits the budget,
    preferring an even block count (>=2) for v7x megacore balance."""
    # Sublane multiple for the input dtype: 8 (f32), 16 (bf16/f16), 32 (int8).
    sub = max(8, 32 // max(in_itemsize, 1))
    if M <= sub:
        return M  # single block equal to the full (small) row extent

    # Per-row resident bytes: 2x in-block + 2x out-block (double buffering)
    # plus ~2 f32 temporaries (upcast x and the normalized product).
    per_row = D * (2 * in_itemsize + 2 * out_itemsize + 2 * 4)
    budget = min(vmem_cap // 3, 40 * 1024 * 1024)
    tm = max(sub, (min(budget // max(per_row, 1), M) // sub) * sub)

    # Nudge to an even number of blocks (>= 2) when it costs little: the
    # "parallel" grid axis then splits evenly across v7x's 2 TensorCores.
    nb = _cdiv(M, tm)
    if nb % 2 == 1:
        cand = _cdiv(_cdiv(M, nb + 1), sub) * sub  # round up to sublane mult
        cand = min(cand, tm)
        if cand >= sub and _cdiv(M, cand) % 2 == 0:
            tm = cand
    return tm


# ----------------------------------------------------------------------------
# Wrapper
# ----------------------------------------------------------------------------
def t5_layer_norm(x, weight, eps=1e-6):
    """Equivalent of torch T5LayerNorm.forward for an input of shape (..., D)."""
    orig_shape = x.shape
    D = orig_shape[-1]
    M = math.prod(orig_shape[:-1]) if len(orig_shape) > 1 else 1
    x2d = x.reshape(M, D)
    w2d = weight.reshape(1, D)

    in_item = x2d.dtype.itemsize
    out_item = in_item  # output written in the input dtype
    vmem_cap = _vmem_capacity_bytes()
    tm = _pick_row_tile(M, D, in_item, out_item, vmem_cap)
    num_blocks = _cdiv(M, tm)

    # Scoped-VMEM limit sized from the true footprint (double-buffered blocks
    # + f32 temporaries + the tiny weight row) plus margin; stays well under
    # physical VMEM on every generation (v5e/v6e 128 MiB, v7x 64 MiB per TC).
    footprint = 2 * tm * D * (in_item + out_item) + 2 * tm * D * 4 + 2 * D * 4
    vmem_limit = int(min(max(footprint + (16 << 20), 32 << 20),
                         int(vmem_cap * 0.8)))

    cost = pl.CostEstimate(
        flops=4 * M * D,
        transcendentals=M,
        bytes_accessed=M * D * (in_item + out_item) + D * weight.dtype.itemsize,
    )

    out = pl.pallas_call(
        functools.partial(t5_layernorm_kernel, eps=eps),
        out_shape=jax.ShapeDtypeStruct((M, D), x.dtype),
        grid=(num_blocks,),
        in_specs=[
            pl.BlockSpec((tm, D), lambda i: (i, 0)),
            pl.BlockSpec((1, D), lambda i: (0, 0)),
        ],
        out_specs=pl.BlockSpec((tm, D), lambda i: (i, 0)),
        compiler_params=pltpu.CompilerParams(
            dimension_semantics=("parallel",),
            vmem_limit_bytes=vmem_limit,
        ),
        cost_estimate=cost,
    )(x2d, w2d)

    return out.reshape(orig_shape)


# ----------------------------------------------------------------------------
if __name__ == "__main__":
    key = jax.random.PRNGKey(0)
    kx, kw = jax.random.split(key)

    # Small shapes; seq=13 makes M=26 so the ragged / partial-last-block path
    # (no wrapper pad/slice) is exercised.
    batch, seq, hidden = 2, 13, 256
    eps = 1e-6

    x = jax.random.normal(kx, (batch, seq, hidden), dtype=jnp.float32)
    weight = (1.0 + 0.1 * jax.random.normal(kw, (hidden,))).astype(jnp.float32)

    out = jax.block_until_ready(t5_layer_norm(x, weight, eps=eps))

    # Pure-JAX reference (matches the torch forward in f32).
    var = jnp.mean(x * x, axis=-1, keepdims=True)
    ref = weight * (x * jax.lax.rsqrt(var + eps))

    assert out.shape == x.shape
    assert bool(jnp.all(jnp.isfinite(out)))
    assert bool(jnp.allclose(out, ref, atol=1e-5, rtol=1e-5))
    print("KERNEL_OK")
</pallas_src>

<mosaic_0001>
module attributes {stable_mosaic.version = 11 : i64} {
  func.func @t5_layernorm_kernel(%arg0: i32, %arg1: memref<24x256xf32, #tpu.memory_space<vmem>>, %arg2: memref<1x256xf32, #tpu.memory_space<vmem>>, %arg3: memref<24x256xf32, #tpu.memory_space<vmem>>) attributes {dimension_semantics = [#tpu.dimension_semantics<parallel>], iteration_bounds = array<i64: 2>, scalar_prefetch = 0 : i64, scratch_operands = 0 : i64, tpu.core_type = #tpu.core_type<tc>, window_params = [{transform_indices = @transform_0, window_bounds = array<i64: 24, 256>}, {pipeline_mode = #tpu.pipeline_mode<synchronous>, transform_indices = @transform_1, window_bounds = array<i64: 1, 256>}, {transform_indices = @transform_2, window_bounds = array<i64: 24, 256>}]} {
    %c0 = arith.constant 0 : index
    %c0_0 = arith.constant 0 : index
    %0 = vector.load %arg1[%c0, %c0_0] : memref<24x256xf32, #tpu.memory_space<vmem>>, vector<24x256xf32>
    %1 = arith.mulf %0, %0 : vector<24x256xf32>
    %cst = arith.constant dense<0.000000e+00> : vector<24xf32>
    %2 = vector.multi_reduction <add>, %1, %cst [1] : vector<24x256xf32> to vector<24xf32>
    %3 = vector.shape_cast %2 : vector<24xf32> to vector<24x1xf32>
    %cst_1 = arith.constant 2.560000e+02 : f32
    %4 = vector.broadcast %cst_1 : f32 to vector<24x1xf32>
    %5 = arith.divf %3, %4 : vector<24x1xf32>
    %cst_2 = arith.constant 9.99999997E-7 : f32
    %6 = vector.broadcast %cst_2 : f32 to vector<24x1xf32>
    %7 = arith.addf %5, %6 : vector<24x1xf32>
    %8 = math.rsqrt %7 : vector<24x1xf32>
    %9 = vector.broadcast %8 : vector<24x1xf32> to vector<24x256xf32>
    %10 = arith.mulf %0, %9 : vector<24x256xf32>
    %c0_3 = arith.constant 0 : index
    %c0_4 = arith.constant 0 : index
    %11 = vector.load %arg2[%c0_3, %c0_4] : memref<1x256xf32, #tpu.memory_space<vmem>>, vector<1x256xf32>
    %12 = vector.broadcast %11 : vector<1x256xf32> to vector<24x256xf32>
    %13 = arith.mulf %12, %10 : vector<24x256xf32>
    %c0_5 = arith.constant 0 : index
    %c0_6 = arith.constant 0 : index
    %14 = vector.load %arg3[%c0_5, %c0_6] : memref<24x256xf32, #tpu.memory_space<vmem>>, vector<24x256xf32>
    tpu.vector_store %arg3[%c0_5, %c0_6], %13 {strides = array<i32>} : memref<24x256xf32, #tpu.memory_space<vmem>>, vector<24x256xf32>,
    return
  }
  func.func @transform_0(%arg0: i32) -> (i32, i32) {
    %c0_i32 = arith.constant 0 : i32
    %c0_i32_0 = arith.constant 0 : i32
    return %arg0, %c0_i32 : i32, i32
  }
  func.func @transform_1(%arg0: i32) -> (i32, i32) {
    %c0_i32 = arith.constant 0 : i32
    %c0_i32_0 = arith.constant 0 : i32
    %c0_i32_1 = arith.constant 0 : i32
    return %c0_i32, %c0_i32_0 : i32, i32
  }
  func.func @transform_2(%arg0: i32) -> (i32, i32) {
    %c0_i32 = arith.constant 0 : i32
    %c0_i32_0 = arith.constant 0 : i32
    return %arg0, %c0_i32 : i32, i32
  }
}

</mosaic_0001>

<bundles_post_ra>
// kernel: tpu_custom_call.1
= control target key start
LH: loop header
LB: loop body
LE: loop exit
PB: predicated region body
PF: predicated region fallthrough
CT: control target
= control target key end

     0   :  { %7 = vsyncpa [#allocation3], 0  ;;  %s907_s0 = inlined_call_operand.hbm [shape: f32[26,256], index: 0, kind: input, shape index: {}]   ;;  %s908_s1 = inlined_call_operand.hbm [shape: f32[1,256], index: 1, kind: input, shape index: {}]   ;;  %s909_s2 = inlined_call_operand.hbm [shape: f32[26,256], index: 2, kind: output, shape index: {}]  }
   0x1   :  { %9 = vsyncpa [#allocation3 + $0x1], 0 }
   0x2   :  { %10 = vsyncpa [#allocation6], 0 }
   0x3   :  { %11 = vsyncpa [#allocation4], 0 }
   0x4   :  { %13 = vsyncpa [#allocation4 + $0x1], 0  ;;  %s666_s9 = smov 0   ;;  %s668_s10 = smov 0  }
   0x5   :  { %s670_s11 = smov 0   ;;  %s672_s12 = smov 0  }
   0x6 LB: > { %s687_s13 = sadd.s32 4294967295, %s641_s12   ;;  %s396_s14 = sadd.s32 4294967294, %s641_s12   ;;  %s641_s12 = sphi %s672_s12, %s926_s12   ;;  %s637_s11 = sphi %s670_s11, %s925_s11   ;;  %s633_s10 = sphi %s668_s10, %s924_s10   ;;  %s629_s9 = sphi %s666_s9, %s923_s9  }
   0x7   : > { %s691_s15 = sadd.s32 1, %s641_s12   ;;  %s26_s16 = sadd.s32 1, %s637_s11 }
   0x8   : > { %s23_s17 = ssub.s32 %s641_s12, %s691_s15  ;;  %p33_p0 = scmp.ne.s32.totalorder %s637_s11, %s633_s10 }
   0x9   : > { %p24_p1 = scmp.eq.s32.totalorder %s23_s17, 0  ;;  %p34_p2 = scmp.eq.s32.totalorder %s641_s12, 0 }
   0xa   : > { %p39_p3 = scmp.ne.s32.totalorder %s633_s10, %s629_s9  ;;  %p911_p4 = scmp.eq.s32.totalorder %s687_s13, 0 }
   0xb   : > { %s703_s18 = scalar_select %p24_p1, %s637_s11, %s26_s16  }
   0xc   : > { %p705_p5 = por %p34_p2, %p33_p0  ;;  %p711_p6 = por %p911_p4, %p39_p3 }
   0xd   : > { %p84_p7 = scmp.eq.s32.totalorder %s687_s13, 1  ;;  %p90_p8 = scmp.eq.s32.totalorder %s396_s14, 1 }
   0xe   : > { %p397_p9 = scmp.ge.s32.totalorder %s641_s12, 1  ;;  %p97_p10 = scmp.lt.s32.totalorder %s641_s12, 3 }
   0xf   : > { %p718_p11 = por %p84_p7, %p33_p0  ;;  %p722_p12 = por %p90_p8, %p39_p3 }
  0x10   : > { %p726_p13 = pnand %p397_p9, %p97_p10  ;;  %s109_s26 = sshll.u32 %s908_s1, 4  ;;  %s110_s26 = int_to_ptr.hbm [resolvable:$true] %s109_s26 }
  0x11   : > { %s915_s22 = scalar_select %p722_p12, 1, 0 }
  0x12   : > { %p434_p1 = pneg %p726_p13  ;;  %s643_s27 = smov [#allocation5]  }
  0x13   : > { %s111_s28 = sshll.u32 %s643_s27, 4  ;;  %p910_p2 = scmp.ge.s32.totalorder %s641_s12, 2  ;;  %s112_s28 = int_to_ptr.vmem [resolvable:$true] %s111_s28 }
  0x14   : > { %p435_p0 = pnand %p434_p1, %p911_p4 }
  0x15   : > { %118 = sbr.rel (%p910_p2) target bundleno = 64 (0x40), region = 20 }
  0x16   : > { %437 = dma.hbm_to_vmem [thread:$0]  (!%p435_p0), %s110_s26, 32, %s112_s28, [#allocation6]  }
  0x1a   : > { %121 = sbr.rel (!%p705_p5) target bundleno = 64 (0x40), region = 24  ;;  %s122_s29 = sand.u32 (%p705_p5), 1, %s637_s11  }
  0x1b   : > { %s127_s30 = smul.u32 (%p705_p5), 3, %s641_s12  ;;  %s747_s8 = scalar_lea.sflag (%p705_p5), [#allocation3], %s122_s29 }
  0x1c   : > { %s426_s3 = smul.u32 (%p705_p5), 48, %s122_s29 }
  0x1d   : > { %s128_s4 = ssub.s32 (%p705_p5), 4, %s127_s30 }
  0x1e   : > { %p129_p3 = scmp.lt.s32.totalorder (%p705_p5), %s128_s4, 3  ;;  %s126_s14 = scalar_lea.vmem (%p705_p5), [#allocation2], %s426_s3 }
  0x20   : > { %s928_s4 = smov (!%p129_p3, %s128_s4), 3 }
  0x21   : > { %s418_s5 = sshll.u32 %s928_s4, 4 }
  0x22   : > { %s133_s6 = ssub.s32 48, %s418_s5 }
  0x23   : > { %s134_s7 = sshll.u32 %s133_s6, 4 }
  0x24   : > { %135 = vsyncadd %s747_s8, %s134_s7  ;;  %p750_p5 = scmp.ne.s32.totalorder %s418_s5, 0  ;;  %s424_s17 = smul.u32 48, %s641_s12 }
  0x25   : > { %s755_s19 = sshll.u32 %s126_s14, 4  ;;  %s406_s24 = sshll.u32 %s928_s4, 8  ;;  %s144_s19 = int_to_ptr.vmem [resolvable:$true] %s755_s19 }
  0x26   : > { %s139_s27 = scalar_lea.hbm %s907_s0, %s424_s17  ;;  %s523_s30 = sshrl.u32 %s406_s24, 4 }
  0x27   : > { %s141_s28 = sshll.u32 %s139_s27, 4  ;;  %s532_s7 = scalar_lea.hbm %s907_s0, 64  ;;  %s762_s28 = int_to_ptr.hbm [resolvable:$true] %s141_s28 }
  0x28   : > { %s521_s29 = sshra.s32 %s762_s28, 4  ;;  %s522_s29 = int_to_ptr.hbm [resolvable:$true] %s521_s29 }
  0x29   : > { %s528_s3 = scalar_lea.hbm %s522_s29, %s523_s30  ;;  %p533_p10 = scmp.lt.s32.totalorder %s522_s29, %s907_s0 }
  0x2a   : > { %p529_p7 = scmp.ne.s32.totalorder %s522_s29, %s528_s3  ;;  %p534_p1 = scmp.lt.s32.totalorder %s532_s7, %s528_s3 }
  0x2c   : > { %p530_p8 = pnand %p529_p7, %p750_p5  ;;  %p535_p0 = por %p534_p1, %p533_p10 }
  0x2e   : > { %p531_p9 = pneg %p530_p8 }
  0x30   : > { %p536_p3 = pnand %p535_p0, %p531_p9 }
  0x32   : > { %539 = shalt.err (!%p536_p3)
}
  0x33   : > { %s540_s25 = sshra.s32 %s144_s19, 4  ;;  %s644_s27 = smov [#allocation2]   ;;  %s541_s25 = int_to_ptr.vmem [resolvable:$true] %s540_s25 }
  0x34   : > { %s547_s26 = scalar_lea.vmem %s541_s25, %s523_s30  ;;  %s551_s5 = scalar_lea.vmem %s644_s27, 96 }
  0x35   : > { %p548_p7 = scmp.ne.s32.totalorder %s541_s25, %s547_s26  ;;  %p553_p4 = scmp.lt.s32.totalorder %s551_s5, %s547_s26 }
  0x37   : > { %p549_p8 = pnand %p548_p7, %p750_p5 }
  0x39   : > { %p550_p2 = pneg %p549_p8 }
  0x3b   : > { %p555_p12 = pnand %p553_p4, %p550_p2 }
  0x3d   : > { %558 = shalt.err (!%p555_p12)
}
  0x3e   : > { %s645_s29 = smov 256   ;;  %s646_s3 = smov 16  }
  0x3f   : > { %149 = dma.hbm_to_vmem [thread:$0]  (%p750_p5), %s762_s28, %s406_s24, %s144_s19, %s747_s8, %s645_s29, %s645_s29, %s646_s3  }
  0x40 PF: > { %155 = sbr.rel (%p726_p13) target bundleno = 262 (0x106), region = 28  ;;  %s790_s30 = sand.u32 (!%p726_p13), 1, %s633_s10  }
  0x41   : > { %s427_s6 = smul.u32 (!%p726_p13), 48, %s790_s30  ;;  %s158_s7 = scalar_lea.sflag (!%p726_p13), [#allocation3], %s790_s30 }
  0x43   : > { %s161_s14 = scalar_lea.vmem (!%p726_p13), [#allocation2], %s427_s6 }
  0x45   : > { %616 = dma.done.wait (%p711_p6), %s158_s7, 768  }
  0x46   : > { %618 = vsyncadd (%p711_p6), %s158_s7, 4294966528  ;;  %p918_p4 = scmp.eq.s32.totalorder %s687_s13, 0 }
  0x48   : > { %620 = dma.done.wait (%p918_p4), [#allocation6], 32   ;;  %p919_p12 = pmov %p918_p4 }
  0x49   : > { %v804_v0 = vld [vmem:[%s161_s14 + $0x20] sm:$0xff]  ;;  %v806_v1 = vld [vmem:[%s161_s14 + $0x28] sm:$0xff]  ;;  %v820_v9 = vld [vmem:[%s161_s14 + $0x10] sm:$0xff]  ;;  %v647_v15 = vmov 256.0   ;;  %s834_s20 = scalar_lea.vmem [#allocation7], %s427_s6  ;;  %s289_s23 = scalar_lea.sflag [#allocation4], %s790_s30 }
  0x4a   : > { %622 = vsyncadd (%p919_p12), [#allocation6], 4294967264  ;;  %v808_v2 = vld [vmem:[%s161_s14] sm:$0xff]  ;;  %v210_v3 = vmul.f32 %v804_v0, %v804_v0  ;;  %v211_v4 = vmul.f32 %v806_v1, %v806_v1  ;;  %v814_v5 = vld [vmem:[%s161_s14 + $0x8] sm:$0xff]  ;;  %v208_v12 = vmul.f32 %v820_v9, %v820_v9  ;;  %483 = vrcp.f32 %v647_v15  ;;  %s296_s4 = smul.u32 (%p718_p11), 3, %s687_s13 }
  0x4b   : > { %v206_v6 = vmul.f32 %v808_v2, %v808_v2  ;;  %v207_v7 = vmul.f32 %v814_v5, %v814_v5  ;;  %v822_v10 = vld [vmem:[%s161_s14 + $0x18] sm:$0xff]  ;;  %v270_v38 = vld [vmem:[#allocation5] sm:$0x3] }
  0x4c   : > { %v218_v8 = vadd.f32 %v211_v4, %v210_v3  ;;  %v209_v13 = vmul.f32 %v822_v10, %v822_v10  ;;  %v272_v43 = vperm.slane %v270_v38, 0  ;;  %v273_v45 = vperm.slane %v270_v38, 1  ;;  %s297_s8 = ssub.s32 (%p718_p11), 4, %s296_s4 }
  0x4d   : > { %v212_v11 = vadd.f32 %v207_v7, %v206_v6  ;;  %p298_p6 = scmp.lt.s32.totalorder (%p718_p11), %s297_s8, 3 }
  0x4e   : > { %219 = vadd.xlane.f32.xlu1 %v218_v8  ;;  %v215_v14 = vadd.f32 %v209_v13, %v208_v12 }
  0x4f   : > { %213 = vadd.xlane.f32.xlu0 %v212_v11 }
  0x50   : > { %v484_v16 = vpop.eup %483 }
  0x51   : > { %v222_v17 = vmul.f32 256.0, %v484_v16  ;;  %vm226_vm0 = vweird.f32 %v484_v16 }
  0x53   : > { %v223_v18 = vsub.f32 1.0, %v222_v17 }
  0x55   : > { %v224_v19 = vmul.f32 %v484_v16, %v223_v18 }
  0x57   : > { %216 = vadd.xlane.f32.xlu0 %v215_v14  ;;  %v225_v20 = vadd.f32 %v484_v16, %v224_v19 }
  0x59   : > { %v227_v21 = vsel %vm226_vm0, %v484_v16, %v225_v20 }
  0xc1   : > { %v220_v22 = vpop.xlane.xlu1 %219 }
  0xc2   : > { %v230_v23 = vmul.f32 %v227_v21, %v220_v22  ;;  %v214_v24 = vpop.xlane.xlu0 %213 }
  0xc3   : > { %v228_v25 = vmul.f32 %v227_v21, %v214_v24 }
  0xc4   : > { %v233_v26 = vadd.f32 1e-06, %v230_v23 }
  0xc5   : > { %v231_v27 = vadd.f32 1e-06, %v228_v25 }
  0xc6   : > { %485 = vrsqrt.f32 %v233_v26  ;;  %vm260_vm1 = vweird.f32 %v233_v26 }
  0xc7   : > { %487 = vrsqrt.f32 %v231_v27  ;;  %vm240_vm5 = vweird.f32 %v231_v27 }
  0xca   : > { %v217_v28 = vpop.xlane.xlu0 %216 }
  0xcb   : > { %v229_v29 = vmul.f32 %v227_v21, %v217_v28 }
  0xcc   : > { %v486_v30 = vpop.eup %485 }
  0xcd   : > { %v488_v31 = vpop.eup %487  ;;  %v255_v32 = vmul.f32 %v486_v30, %v233_v26  ;;  %v232_v33 = vadd.f32 1e-06, %v229_v29  ;;  %vm261_vm2 = vweird.f32 %v486_v30 }
  0xce   : > { %v235_v34 = vmul.f32 %v488_v31, %v231_v27  ;;  %vm241_vm3 = vweird.f32 %v488_v31  ;;  %vm262_vm4 = vmor %vm260_vm1, %vm261_vm2 }
  0xcf   : > { %v256_v35 = vmul.f32 %v486_v30, %v255_v32  ;;  %489 = vrsqrt.f32 %v232_v33  ;;  %vm242_vm6 = vmor %vm240_vm5, %vm241_vm3  ;;  %vm250_vm8 = vweird.f32 %v232_v33 }
  0xd0   : > { %v236_v36 = vmul.f32 %v488_v31, %v235_v34 }
  0xd1   : > { %v257_v37 = vmul.f32 0.5, %v256_v35 }
  0xd2   : > { %v237_v39 = vmul.f32 0.5, %v236_v36 }
  0xd3   : > { %v258_v40 = vsub.f32 1.5, %v257_v37 }
  0xd4   : > { %v238_v41 = vsub.f32 1.5, %v237_v39 }
  0xd5   : > { %v490_v42 = vpop.eup %489  ;;  %v259_v44 = vmul.f32 %v486_v30, %v258_v40 }
  0xd6   : > { %v239_v46 = vmul.f32 %v488_v31, %v238_v41  ;;  %v245_v47 = vmul.f32 %v490_v42, %v232_v33  ;;  %vm251_vm7 = vweird.f32 %v490_v42 }
  0xd7   : > { %v263_v48 = vsel %vm262_vm4, %v486_v30, %v259_v44  ;;  %vm252_vm9 = vmor %vm250_vm8, %vm251_vm7 }
  0xd8   : > { %v268_v49 = vmul.f32 %v263_v48, %v804_v0  ;;  %v269_v50 = vmul.f32 %v263_v48, %v806_v1  ;;  %v243_v51 = vsel %vm242_vm6, %v488_v31, %v239_v46  ;;  %v246_v52 = vmul.f32 %v490_v42, %v245_v47 }
  0xd9   : > { %v264_v53 = vmul.f32 %v243_v51, %v808_v2  ;;  %v265_v54 = vmul.f32 %v243_v51, %v814_v5 }
  0xda   : > { %v280_v55 = vmul.f32 %v272_v43, %v268_v49  ;;  %v281_v56 = vmul.f32 %v273_v45, %v269_v50  ;;  %v247_v57 = vmul.f32 0.5, %v246_v52 }
  0xdb   : > { %v276_v58 = vmul.f32 %v272_v43, %v264_v53  ;;  %v277_v59 = vmul.f32 %v273_v45, %v265_v54 }
  0xdc   : > { %286 = vst [vmem:[%s834_s20 + $0x20] sm:$0xff] %v280_v55  ;;  %v248_v60 = vsub.f32 1.5, %v247_v57 }
  0xdd   : > { %287 = vst [vmem:[%s834_s20 + $0x28] sm:$0xff] %v281_v56 }
  0xde   : > { %282 = vst [vmem:[%s834_s20] sm:$0xff] %v276_v58  ;;  %v249_v61 = vmul.f32 %v490_v42, %v248_v60 }
  0xdf   : > { %283 = vst [vmem:[%s834_s20 + $0x8] sm:$0xff] %v277_v59 }
  0xe0   : > { %v253_v62 = vsel %vm252_vm9, %v490_v42, %v249_v61 }
  0xe1   : > { %v266_v63 = vmul.f32 %v253_v62, %v820_v9  ;;  %v267_v0 = vmul.f32 %v253_v62, %v822_v10 }
  0xe2   : > { %295 = sbr.rel (!%p718_p11) target bundleno = 262 (0x106), region = 40 }
  0xe3   : > { %v278_v1 = vmul.f32 %v272_v43, %v266_v63  ;;  %v279_v2 = vmul.f32 %v273_v45, %v267_v0 }
  0xe5   : > { %284 = vst [vmem:[%s834_s20 + $0x10] sm:$0xff] %v278_v1 }
  0xe6   : > { %285 = vst [vmem:[%s834_s20 + $0x18] sm:$0xff] %v279_v2 }
  0xe7   : > { %s930_s8 = smov (!%p298_p6, %s297_s8), 3 }
  0xe8   : > { %s421_s16 = sshll.u32 %s930_s8, 4 }
  0xe9   : > { %s302_s19 = ssub.s32 48, %s421_s16 }
  0xea   : > { %s303_s24 = sshll.u32 %s302_s19, 4 }
  0xeb   : > { %304 = vsyncadd %s289_s23, %s303_s24  ;;  %p853_p13 = scmp.ne.s32.totalorder %s421_s16, 0  ;;  %s425_s28 = smul.u32 48, %s687_s13 }
  0xec   : > { %s310_s17 = sshll.u32 %s834_s20, 4  ;;  %s415_s25 = sshll.u32 %s930_s8, 8  ;;  %s863_s17 = int_to_ptr.vmem [resolvable:$true] %s310_s17 }
  0xed   : > { %s308_s5 = scalar_lea.hbm %s909_s2, %s425_s28  ;;  %s560_s3 = sshra.s32 %s863_s17, 4  ;;  %s561_s3 = int_to_ptr.vmem [resolvable:$true] %s560_s3 }
  0xee   : > { %s312_s29 = sshll.u32 %s308_s5, 4  ;;  %s562_s6 = sshrl.u32 %s415_s25, 4  ;;  %s865_s29 = int_to_ptr.hbm [resolvable:$true] %s312_s29 }
  0xef   : > { %s567_s7 = scalar_lea.vmem %s561_s3, %s562_s6  ;;  %s648_s13 = smov [#allocation7]  }
  0xf0   : > { %p568_p11 = scmp.ne.s32.totalorder %s561_s3, %s567_s7  ;;  %s571_s14 = scalar_lea.vmem %s648_s13, 96 }
  0xf1   : > { %p573_p9 = scmp.lt.s32.totalorder %s571_s14, %s567_s7 }
  0xf2   : > { %p569_p2 = pnand %p568_p11, %p853_p13 }
  0xf4   : > { %p570_p5 = pneg %p569_p2 }
  0xf6   : > { %p575_p10 = pnand %p573_p9, %p570_p5 }
  0xf8   : > { %578 = shalt.err (!%p575_p10)
}
  0xf9   : > { %s579_s20 = sshra.s32 %s865_s29, 4  ;;  %s590_s24 = scalar_lea.hbm %s909_s2, 64  ;;  %s580_s20 = int_to_ptr.hbm [resolvable:$true] %s579_s20 }
  0xfa   : > { %s586_s4 = scalar_lea.hbm %s580_s20, %s562_s6  ;;  %p591_p7 = scmp.lt.s32.totalorder %s580_s20, %s909_s2 }
  0xfb   : > { %p587_p1 = scmp.ne.s32.totalorder %s580_s20, %s586_s4  ;;  %p592_p8 = scmp.lt.s32.totalorder %s590_s24, %s586_s4 }
  0xfd   : > { %p588_p0 = pnand %p587_p1, %p853_p13  ;;  %p593_p4 = por %p592_p8, %p591_p7 }
  0xff   : > { %p589_p3 = pneg %p588_p0 }
 0x101   : > { %p594_p12 = pnand %p593_p4, %p589_p3 }
 0x103   : > { %597 = shalt.err (!%p594_p12)
}
 0x104   : > { %s649_s27 = smov 256   ;;  %s650_s5 = smov 16  }
 0x105   : > { %318 = dma.vmem_to_hbm [thread:$0]  (%p853_p13), %s863_s17, %s415_s25, %s865_s29, %s289_s23, %s649_s27, %s649_s27, %s650_s5  }
 0x106 PF: > { %s327_s3 = sand.u32 1, %s629_s9   ;;  %p921_p6 = scmp.ne.s32.totalorder %s915_s22, 0 }
 0x107   : > { %p922_p11 = scmp.ge.s32.totalorder %s641_s12, 2  ;;  %s328_s6 = scalar_lea.sflag [#allocation4], %s327_s3 }
 0x109   : > { %p439_p2 = pnand %p922_p11, %p921_p6 }
 0x10b   : > { %p440_p5 = pneg %p439_p2 }
 0x10d   : > { %624 = dma.done.wait (%p440_p5), %s328_s6, 768  }
 0x10e   : > { %626 = vsyncadd (%p440_p5), %s328_s6, 4294966528  ;;  %p16_p9 = scmp.ge.s32.totalorder %s691_s15, 4   ;;  %s923_s9 = smov %s633_s10 }
 0x10f   : > { %s924_s10 = smov %s637_s11  ;;  %s925_s11 = smov %s703_s18 }
 0x110   : > { %s926_s12 = smov %s691_s15  ;;  %18 = sbr.rel (!%p16_p9) target bundleno = 6 (0x6), region = 77 }
 0x115   :  { %334 = vsyncpa [#allocation3], 1 }
 0x116   :  { %336 = vsyncpa [#allocation3 + $0x1], 1 }
 0x117   :  { %337 = vsyncpa [#allocation6], 1 }
 0x118   :  { %338 = vsyncpa [#allocation4], 1 }
 0x119   :  { %340 = vsyncpa [#allocation4 + $0x1], 1 }

</bundles_post_ra>
